<compile_context>
chip_gen: v6e
topology: v6e:2x2x1
jax: 0.10.0
libtpu: 0.0.40
codegen_flags: <defaults>
</compile_context>

<pallas_src>
import functools

import jax
import jax.numpy as jnp
from jax.experimental import pallas as pl
from jax.experimental.pallas import tpu as pltpu

_LANE = 128
_SUBLANE = 8


def l2_norm_kernel(alpha_ref, x_ref, o_ref, *, eps):
    # alpha_ref: SMEM (1,) scalar parameter
    # x_ref / o_ref: VMEM (B_BLK, C, ROW_TILE, 128) block (lane-dense spatial tile)
    x = x_ref[...].astype(jnp.float32)                       # (B, C, R, 128)
    sq_sum = jnp.sum(x * x, axis=1, keepdims=True)           # (B, 1, R, 128)
    norm = jnp.sqrt(sq_sum)                                   # torch.norm(p=2, dim=1)
    # Exact reciprocal keeps the 1e-5 tolerance of x / (||x|| + eps); one recip per
    # pixel + one multiply per element instead of a per-element divide.
    scale = alpha_ref[0] * pl.reciprocal(norm + eps, approx=False)
    o_ref[...] = (x * scale).astype(o_ref.dtype)


def _round_up(x, m):
    return ((x + m - 1) // m) * m


def _vmem_budget():
    """(per-call block budget, vmem_limit_bytes) derived from the chip's VMEM."""
    try:
        cap = int(pltpu.get_tpu_info().vmem_capacity_bytes)
    except Exception:
        cap = 64 * 1024 * 1024            # conservative (v7x-sized) fallback
    vmem_limit = min(int(0.75 * cap), 100 * 1024 * 1024)
    budget = vmem_limit // 2              # budget covers in+out, double-buffered
    return budget, vmem_limit


def l2_normalization(x, alpha, eps=1e-6):
    """x: (N, C, H, W); alpha: (1,) learnable scale. Matches the PyTorch module."""
    N, C, H, W = x.shape
    HW = H * W
    itemsize = jnp.dtype(x.dtype).itemsize

    budget, vmem_limit = _vmem_budget()

    # --- spatial tiling: rows of 128 lane-packed pixels ------------------------
    R = pl.cdiv(HW, _LANE)                         # rows before row padding
    bytes_per_row = 4 * C * _LANE * itemsize       # in+out, double-buffered
    max_rows = max(1, budget // bytes_per_row)

    if R <= max_rows:
        # whole spatial extent per step; block dim == full dim (always legal)
        row_tile = R
        r_pad = R
    else:
        row_tile = max(_SUBLANE, (min(max_rows, R) // _SUBLANE) * _SUBLANE)
        r_pad = _round_up(R, row_tile)
    hw_pad = r_pad * _LANE
    n_row_tiles = r_pad // row_tile

    # --- batch blocking when a single row tile would give tiny grid steps ------
    b_blk = 1
    if n_row_tiles == 1 and N > 1:
        per_img = 4 * C * r_pad * _LANE * itemsize
        max_b = max(1, budget // max(per_img, 1))
        for d in range(min(N, max_b), 0, -1):
            if N % d == 0:
                b_blk = d
                break

    # make sure the chosen blocks (plus slack) actually fit under the limit
    block_bytes = b_blk * C * row_tile * _LANE * itemsize
    vmem_limit = max(vmem_limit, 4 * block_bytes + (4 << 20))

    # --- lane-dense, zero-padded layout ----------------------------------------
    x2 = x.reshape(N, C, HW)
    if hw_pad != HW:
        x2 = jnp.pad(x2, ((0, 0), (0, 0), (0, hw_pad - HW)))
    x4 = x2.reshape(N, C, r_pad, _LANE)

    kernel = functools.partial(l2_norm_kernel, eps=eps)

    cost = pl.CostEstimate(
        flops=3 * N * C * hw_pad,             # square + reduce-add + scale multiply
        transcendentals=2 * N * hw_pad,       # sqrt + reciprocal per pixel
        bytes_accessed=2 * N * C * hw_pad * itemsize,
    )

    out4 = pl.pallas_call(
        kernel,
        out_shape=jax.ShapeDtypeStruct((N, C, r_pad, _LANE), x.dtype),
        grid=(N // b_blk, n_row_tiles),
        in_specs=[
            pl.BlockSpec(memory_space=pltpu.SMEM),                        # alpha
            pl.BlockSpec((b_blk, C, row_tile, _LANE), lambda n, r: (n, 0, r, 0)),
        ],
        out_specs=pl.BlockSpec((b_blk, C, row_tile, _LANE), lambda n, r: (n, 0, r, 0)),
        compiler_params=pltpu.CompilerParams(
            dimension_semantics=("parallel", "parallel"),
            vmem_limit_bytes=int(vmem_limit),
        ),
        cost_estimate=cost,
    )(alpha.astype(jnp.float32), x4)

    out = out4.reshape(N, C, hw_pad)[:, :, :HW]
    return out.reshape(N, C, H, W)


def _reference(x, alpha, eps):
    norm = jnp.sqrt(jnp.sum(x.astype(jnp.float32) ** 2, axis=1, keepdims=True))
    return (alpha[0] * (x / (norm + eps))).astype(x.dtype)


if __name__ == "__main__":
    key = jax.random.PRNGKey(0)
    kx, ka, kx2 = jax.random.split(key, 3)

    # Small NCHW conv feature map.
    N, C, H, W = 2, 4, 16, 16
    x = jax.random.normal(kx, (N, C, H, W), dtype=jnp.float32)

    # nn.init.uniform_(alpha, 10.0, 20.0) -- deterministic synthetic init.
    alpha = jax.random.uniform(ka, (1,), minval=10.0, maxval=20.0, dtype=jnp.float32)

    eps = 1e-6
    out = l2_normalization(x, alpha, eps=eps)
    out = jax.block_until_ready(out)

    ref = _reference(x, alpha, eps)
    assert out.shape == x.shape and out.dtype == x.dtype
    assert jnp.allclose(out, ref, atol=1e-5, rtol=1e-5)

    # Exercise the zero-padded (HW not a multiple of 128) path as well.
    x_odd = jax.random.normal(kx2, (N, C, 15, 15), dtype=jnp.float32)
    out_odd = jax.block_until_ready(l2_normalization(x_odd, alpha, eps=eps))
    ref_odd = _reference(x_odd, alpha, eps)
    assert out_odd.shape == x_odd.shape
    assert jnp.allclose(out_odd, ref_odd, atol=1e-5, rtol=1e-5)

    print("KERNEL_OK")
</pallas_src>

<mosaic_0001>
module attributes {stable_mosaic.version = 11 : i64} {
  func.func @l2_norm_kernel(%arg0: i32, %arg1: i32, %arg2: memref<1xf32, #tpu.memory_space<smem>>, %arg3: memref<2x4x2x128xf32, #tpu.memory_space<vmem>>, %arg4: memref<2x4x2x128xf32, #tpu.memory_space<vmem>>) attributes {dimension_semantics = [#tpu.dimension_semantics<parallel>, #tpu.dimension_semantics<parallel>], iteration_bounds = array<i64: 1, 1>, scalar_prefetch = 0 : i64, scratch_operands = 0 : i64, tpu.core_type = #tpu.core_type<tc>, window_params = [{transform_indices = @transform_0, window_bounds = array<i64: 1>}, {transform_indices = @transform_1, window_bounds = array<i64: 2, 4, 2, 128>}, {transform_indices = @transform_2, window_bounds = array<i64: 2, 4, 2, 128>}]} {
    %c0 = arith.constant 0 : index
    %c0_0 = arith.constant 0 : index
    %c0_1 = arith.constant 0 : index
    %c0_2 = arith.constant 0 : index
    %0 = vector.load %arg3[%c0, %c0_0, %c0_1, %c0_2] : memref<2x4x2x128xf32, #tpu.memory_space<vmem>>, vector<2x4x2x128xf32>
    %1 = arith.mulf %0, %0 : vector<2x4x2x128xf32>
    %cst = arith.constant dense<0.000000e+00> : vector<2x2x128xf32>
    %2 = vector.multi_reduction <add>, %1, %cst [1] : vector<2x4x2x128xf32> to vector<2x2x128xf32>
    %3 = vector.shape_cast %2 : vector<2x2x128xf32> to vector<2x1x2x128xf32>
    %4 = math.sqrt %3 : vector<2x1x2x128xf32>
    %c0_3 = arith.constant 0 : index
    %5 = memref.load %arg2[%c0_3] : memref<1xf32, #tpu.memory_space<smem>>
    %cst_4 = arith.constant 9.99999997E-7 : f32
    %6 = vector.broadcast %cst_4 : f32 to vector<2x1x2x128xf32>
    %7 = arith.addf %4, %6 : vector<2x1x2x128xf32>
    %8 = tpu.reciprocal %7 : vector<2x1x2x128xf32> -> vector<2x1x2x128xf32>
    %9 = vector.broadcast %5 : f32 to vector<2x1x2x128xf32>
    %10 = arith.mulf %9, %8 : vector<2x1x2x128xf32>
    %11 = vector.broadcast %10 : vector<2x1x2x128xf32> to vector<2x4x2x128xf32>
    %12 = arith.mulf %0, %11 : vector<2x4x2x128xf32>
    %c0_5 = arith.constant 0 : index
    %c0_6 = arith.constant 0 : index
    %c0_7 = arith.constant 0 : index
    %c0_8 = arith.constant 0 : index
    %13 = vector.load %arg4[%c0_5, %c0_6, %c0_7, %c0_8] : memref<2x4x2x128xf32, #tpu.memory_space<vmem>>, vector<2x4x2x128xf32>
    tpu.vector_store %arg4[%c0_5, %c0_6, %c0_7, %c0_8], %12 {strides = array<i32>} : memref<2x4x2x128xf32, #tpu.memory_space<vmem>>, vector<2x4x2x128xf32>,
    return
  }
  func.func @transform_0(%arg0: i32, %arg1: i32) -> i32 {
    %c0_i32 = arith.constant 0 : i32
    %c0_i32_0 = arith.constant 0 : i32
    return %c0_i32 : i32
  }
  func.func @transform_1(%arg0: i32, %arg1: i32) -> (i32, i32, i32, i32) {
    %c0_i32 = arith.constant 0 : i32
    %c0_i32_0 = arith.constant 0 : i32
    %c0_i32_1 = arith.constant 0 : i32
    return %arg0, %c0_i32, %arg1, %c0_i32_0 : i32, i32, i32, i32
  }
  func.func @transform_2(%arg0: i32, %arg1: i32) -> (i32, i32, i32, i32) {
    %c0_i32 = arith.constant 0 : i32
    %c0_i32_0 = arith.constant 0 : i32
    %c0_i32_1 = arith.constant 0 : i32
    return %arg0, %c0_i32, %arg1, %c0_i32_0 : i32, i32, i32, i32
  }
}

</mosaic_0001>

<bundles_post_ra>
// kernel: tpu_custom_call.1
= control target key start
LH: loop header
LB: loop body
LE: loop exit
PB: predicated region body
PF: predicated region fallthrough
CT: control target
= control target key end

     0   :  { %8 = vsyncpa [#allocation4], 0  ;;  %s211_s0 = inlined_call_operand.<no memory space> [shape: f32[1], index: 0, kind: input, shape index: {}]   ;;  %s212_s1 = inlined_call_operand.hbm [shape: f32[2,4,2,128], index: 1, kind: input, shape index: {}]   ;;  %s213_s2 = inlined_call_operand.hbm [shape: f32[2,4,2,128], index: 2, kind: output, shape index: {}]  }
   0x1   :  { %9 = vsyncpa [#allocation5], 0  ;;  %s169_s9 = smov [#allocation3]  }
   0x2   :  { %s17_s10 = sshll.u32 %s169_s9, 4  ;;  %s18_s10 = int_to_ptr.vmem [resolvable:$true] %s17_s10 }
   0x3   :  { %s133_s11 = scalar_lea.vmem %s18_s10, 256  ;;  %p138_p1 = scmp.lt.s32.totalorder %s18_s10, %s18_s10 }
   0x4   :  { %p134_p0 = scmp.ne.s32.totalorder %s18_s10, %s133_s11  ;;  %p139_p2 = scmp.lt.s32.totalorder %s133_s11, %s133_s11 }
   0x6   :  { %p140_p3 = por %p139_p2, %p138_p1 }
   0x8   :  { %p141_p4 = pnand %p140_p3, %p134_p0 }
   0xa   :  { %144 = shalt.err (!%p141_p4)
}
   0xb   :  { %s170_s12 = smov 32   ;;  %s171_s13 = smov 2  }
   0xc   :  { %23 = dma.hbm_to_vmem [thread:$0]  %s212_s1, 256, %s18_s10, [#allocation4], %s170_s12, %s170_s12, %s171_s13  }
   0xd   :  { %165 = dma.done.wait [#allocation4], 256  }
   0xe   :  { %166 = vsyncadd [#allocation4], 4294967040  ;;  %vm43_vm0 = vcmask 1041408   ;;  %v27_v0 = vld [vmem:[#allocation3] sm:$0x3]  ;;  %v77_v42 = vstv %s211_s0  ;;  %s172_s17 = smov [#allocation6]  }
   0xf   :  { %v28_v1 = vld [vmem:[#allocation3 + $0x2] sm:$0x3]  ;;  %v29_v2 = vld [vmem:[#allocation3 + $0x4] sm:$0x3]  ;;  %v30_v3 = vld [vmem:[#allocation3 + $0x6] sm:$0x3]  ;;  %v35_v4 = vmul.f32 %v27_v0, %v27_v0 }
  0x10   :  { %v36_v5 = vmul.f32 %v28_v1, %v28_v1  ;;  %v37_v6 = vmul.f32 %v29_v2, %v29_v2  ;;  %v31_v7 = vld [vmem:[#allocation3 + $0x8] sm:$0x3]  ;;  %v32_v8 = vld [vmem:[#allocation3 + $0xa] sm:$0x3]  ;;  %v38_v9 = vmul.f32 %v30_v3, %v30_v3  ;;  %v33_v10 = vld [vmem:[#allocation3 + $0xc] sm:$0x3] }
  0x11   :  { %v34_v11 = vld [vmem:[#allocation3 + $0xe] sm:$0x3]  ;;  %v39_v12 = vmul.f32 %v31_v7, %v31_v7  ;;  %v40_v13 = vmul.f32 %v32_v8, %v32_v8  ;;  %v44_v14 = vsel %vm43_vm0, %v35_v4, 0.0  ;;  %v41_v17 = vmul.f32 %v33_v10, %v33_v10  ;;  %s101_s18 = sshll.u32 %s172_s17, 4  ;;  %s102_s18 = int_to_ptr.vmem [resolvable:$true] %s101_s18 }
  0x12   :  { %v45_v15 = vsel %vm43_vm0, %v36_v5, 0.0  ;;  %v47_v16 = vsel %vm43_vm0, %v37_v6, 0.0  ;;  %v42_v19 = vmul.f32 %v34_v11, %v34_v11  ;;  %v49_v21 = vsel %vm43_vm0, %v38_v9, 0.0  ;;  %s145_s0 = scalar_lea.vmem %s102_s18, 256  ;;  %p150_p6 = scmp.lt.s32.totalorder %s102_s18, %s102_s18 }
  0x13   :  { %v46_v18 = vadd.f32 %v45_v15, %v44_v14  ;;  %v51_v20 = vsel %vm43_vm0, %v39_v12, 0.0  ;;  %v52_v22 = vsel %vm43_vm0, %v40_v13, 0.0  ;;  %v54_v23 = vsel %vm43_vm0, %v41_v17, 0.0  ;;  %p146_p5 = scmp.ne.s32.totalorder %s102_s18, %s145_s0  ;;  %p151_p7 = scmp.lt.s32.totalorder %s145_s0, %s145_s0 }
  0x14   :  { %v53_v25 = vadd.f32 %v52_v22, %v51_v20  ;;  %v56_v28 = vsel %vm43_vm0, %v42_v19, 0.0 }
  0x15   :  { %v48_v24 = vadd.f32 %v47_v16, %v46_v18  ;;  %p152_p8 = por %p151_p7, %p150_p6 }
  0x16   :  { %v55_v27 = vadd.f32 %v54_v23, %v53_v25 }
  0x17   :  { %v50_v26 = vadd.f32 %v49_v21, %v48_v24  ;;  %p153_p9 = pnand %p152_p8, %p146_p5 }
  0x18   :  { %v57_v29 = vadd.f32 %v56_v28, %v55_v27 }
  0x19   :  { %117 = vrsqrt.f32 %v50_v26  ;;  %vm60_vm1 = vcmp.eq.f32.partialorder %v50_v26, inf  ;;  %v63_v31 = vand.u32 2147483648, %v50_v26  ;;  %vm62_vm2 = vcmp.eq.f32.partialorder %v50_v26, 0.0 }
  0x1a   :  { %119 = vrsqrt.f32 %v57_v29  ;;  %vm67_vm3 = vcmp.eq.f32.partialorder %v57_v29, inf  ;;  %v70_v35 = vand.u32 2147483648, %v57_v29  ;;  %vm69_vm4 = vcmp.eq.f32.partialorder %v57_v29, 0.0 }
  0x26   :  { %v118_v30 = vpop.eup %117 }
  0x27   :  { %v59_v32 = vmul.f32 %v118_v30, %v50_v26  ;;  %v120_v33 = vpop.eup %119 }
  0x28   :  { %v66_v37 = vmul.f32 %v120_v33, %v57_v29 }
  0x29   :  { %v61_v34 = vsel %vm60_vm1, %v50_v26, %v59_v32 }
  0x2a   :  { %v64_v36 = vsel %vm62_vm2, %v63_v31, %v61_v34  ;;  %v68_v39 = vsel %vm67_vm3, %v57_v29, %v66_v37 }
  0x2b   :  { %v73_v38 = vadd.f32 1e-06, %v64_v36  ;;  %v71_v40 = vsel %vm69_vm4, %v70_v35, %v68_v39 }
  0x2c   :  { %v74_v41 = vadd.f32 1e-06, %v71_v40 }
  0x2d   :  { %121 = vrcp.f32 %v73_v38 }
  0x2e   :  { %123 = vrcp.f32 %v74_v41 }
  0x3a   :  { %v122_v43 = vpop.eup %121 }
  0x3b   :  { %v78_v44 = vmul.f32 %v122_v43, %v77_v42  ;;  %v124_v45 = vpop.eup %123 }
  0x3c   :  { %v79_v50 = vmul.f32 %v124_v45, %v77_v42 }
  0x3d   :  { %v80_v46 = vmul.f32 %v78_v44, %v27_v0  ;;  %v81_v47 = vmul.f32 %v78_v44, %v28_v1  ;;  %v82_v48 = vmul.f32 %v78_v44, %v29_v2  ;;  %v83_v49 = vmul.f32 %v78_v44, %v30_v3 }
  0x3e   :  { %v84_v51 = vmul.f32 %v79_v50, %v31_v7  ;;  %v85_v52 = vmul.f32 %v79_v50, %v32_v8  ;;  %v86_v53 = vmul.f32 %v79_v50, %v33_v10  ;;  %v87_v54 = vmul.f32 %v79_v50, %v34_v11 }
  0x3f   :  { %88 = vst [vmem:[#allocation6] sm:$0x3] %v80_v46  ;;  %89 = vst [vmem:[#allocation6 + $0x2] sm:$0x3] %v81_v47 }
  0x40   :  { %90 = vst [vmem:[#allocation6 + $0x4] sm:$0x3] %v82_v48  ;;  %91 = vst [vmem:[#allocation6 + $0x6] sm:$0x3] %v83_v49 }
  0x41   :  { %92 = vst [vmem:[#allocation6 + $0x8] sm:$0x3] %v84_v51  ;;  %93 = vst [vmem:[#allocation6 + $0xa] sm:$0x3] %v85_v52 }
  0x42   :  { %94 = vst [vmem:[#allocation6 + $0xc] sm:$0x3] %v86_v53  ;;  %95 = vst [vmem:[#allocation6 + $0xe] sm:$0x3] %v87_v54 }
  0x43   :  { %156 = shalt.err (!%p153_p9)
}
  0x44   :  { %107 = dma.vmem_to_hbm [thread:$0]  %s102_s18, 256, %s213_s2, [#allocation5], %s170_s12, %s170_s12, %s171_s13  }
  0x45   :  { %167 = dma.done.wait [#allocation5], 256  }
  0x46   :  { %168 = vsyncadd [#allocation5], 4294967040 }
  0x47   :  { %111 = vsyncpa [#allocation4], 1 }
  0x48   :  { %112 = vsyncpa [#allocation5], 1 }

</bundles_post_ra>
